<compile_context>
chip_gen: v6e
topology: v6e:2x2x1
jax: 0.10.0
libtpu: 0.0.40
codegen_flags: <defaults>
</compile_context>

<pallas_src>
import functools

import jax
import jax.numpy as jnp
from jax.experimental import pallas as pl
from jax.experimental.pallas import tpu as pltpu


def _procrustes_stats_kernel(src_ref, ref_ref, w_ref, out_ref, *,
                             weight_thresh, eps):
    """Single-pass weighted-Procrustes statistics.

    Block shapes (N on lanes, batch tile TB on sublanes):
      src_ref, ref_ref : (3, TB, TN)
      w_ref            : (TB, TN)
      out_ref          : (TB, 16) f32, resident across the N grid axis.
                         While accumulating: [M(9) | A(3) | B(3) | Sw].
                         After finalize:     [H(9) | sc(3) | rc(3) | Sw].
    """
    n_idx = pl.program_id(1)
    n_num = pl.num_programs(1)

    w = w_ref[...].astype(jnp.float32)
    w = jnp.where(w < weight_thresh, jnp.zeros_like(w), w)

    s = [src_ref[i].astype(jnp.float32) for i in range(3)]        # 3 x (TB, TN)
    rw = [ref_ref[j].astype(jnp.float32) * w for j in range(3)]   # weight folded once

    cols = []
    for i in range(3):                       # M_ij = sum_n w * s_i * r_j
        for j in range(3):
            cols.append(jnp.sum(s[i] * rw[j], axis=-1, keepdims=True))
    for i in range(3):                       # A_i = sum_n w * s_i
        cols.append(jnp.sum(s[i] * w, axis=-1, keepdims=True))
    for j in range(3):                       # B_j = sum_n w * r_j
        cols.append(jnp.sum(rw[j], axis=-1, keepdims=True))
    cols.append(jnp.sum(w, axis=-1, keepdims=True))               # Sw
    part = jnp.concatenate(cols, axis=-1)                         # (TB, 16)

    @pl.when(n_idx == 0)
    def _():
        out_ref[...] = part

    @pl.when(n_idx > 0)
    def _():
        out_ref[...] = out_ref[...] + part

    # Finalize: convert raw sums into [H | src_centroid | ref_centroid | Sw].
    @pl.when(n_idx == n_num - 1)
    def _():
        acc = out_ref[...]
        M = acc[:, 0:9]
        A = acc[:, 9:12]
        Bv = acc[:, 12:15]
        Sw = acc[:, 15:16]
        inv = 1.0 / (Sw + eps)               # matches reference: w / (sum(w)+eps)
        sc = A * inv                         # (TB, 3)
        rc = Bv * inv
        S = Sw * inv
        outer = jnp.concatenate(
            [sc[:, i:i + 1] * rc[:, j:j + 1]
             for i in range(3) for j in range(3)], axis=-1)       # (TB, 9)
        H = M * inv - outer * (2.0 - S)
        out_ref[...] = jnp.concatenate([H, sc, rc, Sw], axis=-1)


_N_CHUNK_MAX = 8192                 # max lanes per N chunk when tiling the reduction
_VMEM_BUDGET = 20 * 1024 * 1024     # target double-buffered working set per step


def _procrustes_stats(src_t, ref_t, w, weight_thresh, eps):
    """src_t/ref_t: (3, B, N), w: (B, N) -> H (B,3,3), src_centroid (B,3), ref_centroid (B,3)."""
    _, B, N = src_t.shape
    itemsize = jnp.dtype(src_t.dtype).itemsize
    sub = 8 if itemsize >= 4 else 16          # sublane quantum (bf16 packs 16/sublane-pair)

    # --- N (reduction) tiling -------------------------------------------------
    if N <= _N_CHUNK_MAX:
        tn, n_pad = N, N                      # single full-width chunk (no 128 constraint)
    else:
        n_chunks = pl.cdiv(N, _N_CHUNK_MAX)
        tn = 128 * pl.cdiv(pl.cdiv(N, n_chunks), 128)
        n_pad = tn * pl.cdiv(N, tn)

    # --- batch tile from an honest VMEM budget --------------------------------
    # 2x double-buffered inputs (2 point blocks + 1 weight block) + f32 temps + output.
    per_tb = 2 * 7 * tn * itemsize + 8 * tn * 4 + 2 * 16 * 4
    tb_vmem = max(sub, (_VMEM_BUDGET // per_tb) // sub * sub)
    tb_full = sub * pl.cdiv(B, sub)
    tb_mc = sub * max(1, pl.cdiv(B, 2 * sub))  # >=2 batch steps when B > sub (v7x megacore)
    tb = max(sub, min(tb_full, tb_mc, tb_vmem, 1024))
    b_pad = tb * pl.cdiv(B, tb)

    pad_b, pad_n = b_pad - B, n_pad - N
    if pad_b or pad_n:
        # Zero-padded weights contribute exactly zero to every accumulated sum.
        src_t = jnp.pad(src_t, ((0, 0), (0, pad_b), (0, pad_n)))
        ref_t = jnp.pad(ref_t, ((0, 0), (0, pad_b), (0, pad_n)))
        w = jnp.pad(w, ((0, pad_b), (0, pad_n)))

    kernel = functools.partial(_procrustes_stats_kernel,
                               weight_thresh=float(weight_thresh),
                               eps=float(eps))

    vmem_limit = int(min(60 * 1024 * 1024,
                         max(32 * 1024 * 1024, int(1.5 * per_tb * tb))))

    packed = pl.pallas_call(
        kernel,
        out_shape=jax.ShapeDtypeStruct((b_pad, 16), jnp.float32),
        grid_spec=pltpu.PrefetchScalarGridSpec(
            num_scalar_prefetch=0,
            grid=(b_pad // tb, n_pad // tn),
            in_specs=[
                pl.BlockSpec((3, tb, tn), lambda b, n: (0, b, n)),
                pl.BlockSpec((3, tb, tn), lambda b, n: (0, b, n)),
                pl.BlockSpec((tb, tn), lambda b, n: (b, n)),
            ],
            out_specs=pl.BlockSpec((tb, 16), lambda b, n: (b, 0)),
        ),
        compiler_params=pltpu.CompilerParams(
            dimension_semantics=("parallel", "arbitrary"),
            vmem_limit_bytes=vmem_limit),
    )(src_t, ref_t, w)

    packed = packed[:B]
    H = packed[:, 0:9].reshape(B, 3, 3)
    src_centroid = packed[:, 9:12]
    ref_centroid = packed[:, 12:15]
    return H, src_centroid, ref_centroid


def weighted_procrustes(src_points, ref_points, weights=None, weight_thresh=0.0,
                        eps=1e-5, return_transform=False,
                        src_centroid=None, ref_centroid=None,
                        bf16_inputs=False):
    """JAX / Pallas equivalent of the PyTorch `weighted_procrustes`."""
    if src_points.ndim == 2:
        src_points = src_points[None]
        ref_points = ref_points[None]
        if weights is not None:
            weights = weights[None]
        squeeze_first = True
    else:
        squeeze_first = False

    src_points = jnp.asarray(src_points, jnp.float32)
    ref_points = jnp.asarray(ref_points, jnp.float32)
    B, N, _ = src_points.shape

    if weights is None:
        weights = jnp.ones((B, N), dtype=jnp.float32)
    weights = jnp.asarray(weights, jnp.float32).reshape(B, N)

    if src_centroid is None and ref_centroid is None:
        # Hot path: single-pass statistics in the Pallas kernel.
        # TODO(synk): if the caller can provide points component-major
        # ((3, B, N) contiguous), this transpose pre-pass (an extra HBM
        # read+write of both clouds) disappears entirely.
        in_dtype = jnp.bfloat16 if bf16_inputs else jnp.float32
        src_t = jnp.transpose(src_points, (2, 0, 1)).astype(in_dtype)   # (3, B, N)
        ref_t = jnp.transpose(ref_points, (2, 0, 1)).astype(in_dtype)
        w_in = weights.astype(in_dtype)
        H, sc, rc = _procrustes_stats(src_t, ref_t, w_in, weight_thresh, eps)
    else:
        # Rare external-centroid path: plain JAX, matching the reference exactly.
        w = jnp.where(weights < weight_thresh, jnp.zeros_like(weights), weights)
        w = w / (jnp.sum(w, axis=1, keepdims=True) + eps)
        w = w[:, :, None]
        if src_centroid is None:
            sc3 = jnp.sum(src_points * w, axis=1, keepdims=True)
        else:
            sc3 = jnp.asarray(src_centroid, jnp.float32)
            if sc3.ndim == 2:
                sc3 = sc3[:, None, :]
        if ref_centroid is None:
            rc3 = jnp.sum(ref_points * w, axis=1, keepdims=True)
        else:
            rc3 = jnp.asarray(ref_centroid, jnp.float32)
            if rc3.ndim == 2:
                rc3 = rc3[:, None, :]
        H = jnp.einsum('bni,bnj->bij', src_points - sc3, w * (ref_points - rc3))
        sc = sc3[:, 0, :]
        rc = rc3[:, 0, :]

    # 3x3 SVD / det / rotation assembly — no Pallas primitive, plain JAX.
    # TODO(synk): for very large B, a closed-form 3x3 polar decomposition would
    # avoid the iterative batched SVD on TPU.
    U, _, Vh = jnp.linalg.svd(H)
    V = jnp.swapaxes(Vh, -1, -2)
    Ut = jnp.swapaxes(U, -1, -2)
    det_V_Ut = jnp.linalg.det(V @ Ut)

    eye = jnp.broadcast_to(jnp.eye(3, dtype=jnp.float32), (B, 3, 3))
    eye = eye.at[:, 2, 2].set(jnp.sign(det_V_Ut))   # matches torch.sign (0 if det==0)

    R = V @ eye @ Ut                                            # (B, 3, 3)
    t = rc - jnp.einsum('bij,bj->bi', R, sc)                    # (B, 3)

    if return_transform:
        transform = jnp.broadcast_to(jnp.eye(4, dtype=jnp.float32), (B, 4, 4))
        transform = transform.at[:, :3, :3].set(R)
        transform = transform.at[:, :3, 3].set(t)
        if squeeze_first:
            transform = transform[0]
        return transform
    if squeeze_first:
        R = R[0]
        t = t[0]
    return R, t


class WeightedProcrustes:
    def __init__(self, weight_thresh=0.5, eps=1e-5, return_transform=False,
                 bf16_inputs=False):
        self.weight_thresh = weight_thresh
        self.eps = eps
        self.return_transform = return_transform
        self.bf16_inputs = bf16_inputs

    def __call__(self, src_points, tgt_points, weights=None,
                 src_centroid=None, ref_centroid=None):
        return weighted_procrustes(
            src_points, tgt_points, weights=weights,
            weight_thresh=self.weight_thresh, eps=self.eps,
            return_transform=self.return_transform,
            src_centroid=src_centroid, ref_centroid=ref_centroid,
            bf16_inputs=self.bf16_inputs)


if __name__ == "__main__":
    key = jax.random.PRNGKey(0)

    def make_case(k, B, N):
        k1, k2, k3, k4, k5 = jax.random.split(k, 5)
        src = jax.random.normal(k1, (B, N, 3), dtype=jnp.float32)
        angles = jax.random.uniform(k5, (B,), minval=-1.0, maxval=1.0,
                                    dtype=jnp.float32)
        c, s = jnp.cos(angles), jnp.sin(angles)
        z, o = jnp.zeros_like(c), jnp.ones_like(c)
        R_true = jnp.stack([
            jnp.stack([c, -s, z], axis=-1),
            jnp.stack([s, c, z], axis=-1),
            jnp.stack([z, z, o], axis=-1),
        ], axis=-2)                                              # (B, 3, 3)
        t_true = jax.random.normal(k2, (B, 3), dtype=jnp.float32)
        ref = jnp.einsum('bij,bnj->bni', R_true, src) + t_true[:, None, :]
        ref = ref + 0.01 * jax.random.normal(k3, (B, N, 3), dtype=jnp.float32)
        weights = jax.random.uniform(k4, (B, N), dtype=jnp.float32)
        return src, ref, weights, R_true, t_true

    def ref_stats(src, ref, weights, thresh, eps):
        wr = jnp.where(weights < thresh, jnp.zeros_like(weights), weights)
        wr = wr / (jnp.sum(wr, axis=1, keepdims=True) + eps)
        wr = wr[:, :, None]
        sc = jnp.sum(src * wr, axis=1, keepdims=True)
        rc = jnp.sum(ref * wr, axis=1, keepdims=True)
        H = jnp.einsum('bni,bnj->bij', src - sc, wr * (ref - rc))
        return H, sc[:, 0, :], rc[:, 0, :]

    model = WeightedProcrustes(weight_thresh=0.5, eps=1e-5, return_transform=False)
    k_small, k_big = jax.random.split(key)

    # Case 1: small shapes (single N chunk, batch padding 2 -> 8).
    src, ref, weights, R_true, t_true = make_case(k_small, 2, 128)
    R, t = model(src, ref, weights)
    jax.block_until_ready((R, t))
    assert R.shape == (2, 3, 3) and t.shape == (2, 3)
    H_k, sc_k, rc_k = _procrustes_stats(
        jnp.transpose(src, (2, 0, 1)), jnp.transpose(ref, (2, 0, 1)),
        weights, 0.5, 1e-5)
    H_r, sc_r, rc_r = ref_stats(src, ref, weights, 0.5, 1e-5)
    jax.block_until_ready((H_k, sc_k, rc_k))
    assert jnp.allclose(H_k, H_r, atol=1e-3), "H mismatch (small case)"
    assert jnp.allclose(sc_k, sc_r, atol=1e-4), "src centroid mismatch (small case)"
    assert jnp.allclose(rc_k, rc_r, atol=1e-4), "ref centroid mismatch (small case)"
    assert jnp.allclose(R, R_true, atol=0.05), "rotation not recovered (small case)"
    assert jnp.allclose(t, t_true, atol=0.05), "translation not recovered (small case)"

    # Case 2: N > chunk size (exercises the tiled-N accumulator path) + odd batch.
    src, ref, weights, R_true, t_true = make_case(k_big, 3, 8704)
    R, t = model(src, ref, weights)
    jax.block_until_ready((R, t))
    assert R.shape == (3, 3, 3) and t.shape == (3, 3)
    H_k, sc_k, rc_k = _procrustes_stats(
        jnp.transpose(src, (2, 0, 1)), jnp.transpose(ref, (2, 0, 1)),
        weights, 0.5, 1e-5)
    H_r, sc_r, rc_r = ref_stats(src, ref, weights, 0.5, 1e-5)
    jax.block_until_ready((H_k, sc_k, rc_k))
    assert jnp.allclose(H_k, H_r, atol=1e-3), "H mismatch (tiled case)"
    assert jnp.allclose(sc_k, sc_r, atol=1e-4), "src centroid mismatch (tiled case)"
    assert jnp.allclose(rc_k, rc_r, atol=1e-4), "ref centroid mismatch (tiled case)"
    assert jnp.allclose(R, R_true, atol=0.05), "rotation not recovered (tiled case)"
    assert jnp.allclose(t, t_true, atol=0.05), "translation not recovered (tiled case)"

    print("KERNEL_OK")
</pallas_src>

<mosaic_0001>
module attributes {stable_mosaic.version = 11 : i64} {
  func.func @_procrustes_stats_kernel(%arg0: i32, %arg1: i32, %arg2: memref<3x8x128xf32, #tpu.memory_space<vmem>>, %arg3: memref<3x8x128xf32, #tpu.memory_space<vmem>>, %arg4: memref<8x128xf32, #tpu.memory_space<vmem>>, %arg5: memref<8x16xf32, #tpu.memory_space<vmem>>) attributes {dimension_semantics = [#tpu.dimension_semantics<parallel>, #tpu.dimension_semantics<arbitrary>], iteration_bounds = array<i64: 1, 1>, scalar_prefetch = 0 : i64, scratch_operands = 0 : i64, tpu.core_type = #tpu.core_type<tc>, window_params = [{transform_indices = @transform_0, window_bounds = array<i64: 3, 8, 128>}, {transform_indices = @transform_1, window_bounds = array<i64: 3, 8, 128>}, {transform_indices = @transform_2, window_bounds = array<i64: 8, 128>}, {transform_indices = @transform_3, window_bounds = array<i64: 8, 16>}]} {
    %c0 = arith.constant 0 : index
    %c0_0 = arith.constant 0 : index
    %0 = vector.load %arg4[%c0, %c0_0] : memref<8x128xf32, #tpu.memory_space<vmem>>, vector<8x128xf32>
    %cst = arith.constant 5.000000e-01 : f32
    %1 = vector.broadcast %cst : f32 to vector<8x128xf32>
    %2 = arith.cmpf olt, %0, %1 : vector<8x128xf32>
    %cst_1 = arith.constant 0.000000e+00 : f32
    %3 = vector.broadcast %cst_1 : f32 to vector<8x128xf32>
    %4 = arith.select %2, %3, %0 : vector<8x128xi1>, vector<8x128xf32>
    %c0_2 = arith.constant 0 : index
    %c0_3 = arith.constant 0 : index
    %c0_4 = arith.constant 0 : index
    %5 = vector.load %arg2[%c0_2, %c0_3, %c0_4] : memref<3x8x128xf32, #tpu.memory_space<vmem>>, vector<1x8x128xf32>
    %6 = vector.shape_cast %5 : vector<1x8x128xf32> to vector<8x128xf32>
    %c1 = arith.constant 1 : index
    %c0_5 = arith.constant 0 : index
    %c0_6 = arith.constant 0 : index
    %7 = vector.load %arg2[%c1, %c0_5, %c0_6] : memref<3x8x128xf32, #tpu.memory_space<vmem>>, vector<1x8x128xf32>
    %8 = vector.shape_cast %7 : vector<1x8x128xf32> to vector<8x128xf32>
    %c2 = arith.constant 2 : index
    %c0_7 = arith.constant 0 : index
    %c0_8 = arith.constant 0 : index
    %9 = vector.load %arg2[%c2, %c0_7, %c0_8] : memref<3x8x128xf32, #tpu.memory_space<vmem>>, vector<1x8x128xf32>
    %10 = vector.shape_cast %9 : vector<1x8x128xf32> to vector<8x128xf32>
    %c0_9 = arith.constant 0 : index
    %c0_10 = arith.constant 0 : index
    %c0_11 = arith.constant 0 : index
    %11 = vector.load %arg3[%c0_9, %c0_10, %c0_11] : memref<3x8x128xf32, #tpu.memory_space<vmem>>, vector<1x8x128xf32>
    %12 = vector.shape_cast %11 : vector<1x8x128xf32> to vector<8x128xf32>
    %13 = arith.mulf %12, %4 : vector<8x128xf32>
    %c1_12 = arith.constant 1 : index
    %c0_13 = arith.constant 0 : index
    %c0_14 = arith.constant 0 : index
    %14 = vector.load %arg3[%c1_12, %c0_13, %c0_14] : memref<3x8x128xf32, #tpu.memory_space<vmem>>, vector<1x8x128xf32>
    %15 = vector.shape_cast %14 : vector<1x8x128xf32> to vector<8x128xf32>
    %16 = arith.mulf %15, %4 : vector<8x128xf32>
    %c2_15 = arith.constant 2 : index
    %c0_16 = arith.constant 0 : index
    %c0_17 = arith.constant 0 : index
    %17 = vector.load %arg3[%c2_15, %c0_16, %c0_17] : memref<3x8x128xf32, #tpu.memory_space<vmem>>, vector<1x8x128xf32>
    %18 = vector.shape_cast %17 : vector<1x8x128xf32> to vector<8x128xf32>
    %19 = arith.mulf %18, %4 : vector<8x128xf32>
    %20 = arith.mulf %6, %13 : vector<8x128xf32>
    %cst_18 = arith.constant dense<0.000000e+00> : vector<8xf32>
    %21 = vector.multi_reduction <add>, %20, %cst_18 [1] : vector<8x128xf32> to vector<8xf32>
    %22 = vector.shape_cast %21 : vector<8xf32> to vector<8x1xf32>
    %23 = arith.mulf %6, %16 : vector<8x128xf32>
    %cst_19 = arith.constant dense<0.000000e+00> : vector<8xf32>
    %24 = vector.multi_reduction <add>, %23, %cst_19 [1] : vector<8x128xf32> to vector<8xf32>
    %25 = vector.shape_cast %24 : vector<8xf32> to vector<8x1xf32>
    %26 = arith.mulf %6, %19 : vector<8x128xf32>
    %cst_20 = arith.constant dense<0.000000e+00> : vector<8xf32>
    %27 = vector.multi_reduction <add>, %26, %cst_20 [1] : vector<8x128xf32> to vector<8xf32>
    %28 = vector.shape_cast %27 : vector<8xf32> to vector<8x1xf32>
    %29 = arith.mulf %8, %13 : vector<8x128xf32>
    %cst_21 = arith.constant dense<0.000000e+00> : vector<8xf32>
    %30 = vector.multi_reduction <add>, %29, %cst_21 [1] : vector<8x128xf32> to vector<8xf32>
    %31 = vector.shape_cast %30 : vector<8xf32> to vector<8x1xf32>
    %32 = arith.mulf %8, %16 : vector<8x128xf32>
    %cst_22 = arith.constant dense<0.000000e+00> : vector<8xf32>
    %33 = vector.multi_reduction <add>, %32, %cst_22 [1] : vector<8x128xf32> to vector<8xf32>
    %34 = vector.shape_cast %33 : vector<8xf32> to vector<8x1xf32>
    %35 = arith.mulf %8, %19 : vector<8x128xf32>
    %cst_23 = arith.constant dense<0.000000e+00> : vector<8xf32>
    %36 = vector.multi_reduction <add>, %35, %cst_23 [1] : vector<8x128xf32> to vector<8xf32>
    %37 = vector.shape_cast %36 : vector<8xf32> to vector<8x1xf32>
    %38 = arith.mulf %10, %13 : vector<8x128xf32>
    %cst_24 = arith.constant dense<0.000000e+00> : vector<8xf32>
    %39 = vector.multi_reduction <add>, %38, %cst_24 [1] : vector<8x128xf32> to vector<8xf32>
    %40 = vector.shape_cast %39 : vector<8xf32> to vector<8x1xf32>
    %41 = arith.mulf %10, %16 : vector<8x128xf32>
    %cst_25 = arith.constant dense<0.000000e+00> : vector<8xf32>
    %42 = vector.multi_reduction <add>, %41, %cst_25 [1] : vector<8x128xf32> to vector<8xf32>
    %43 = vector.shape_cast %42 : vector<8xf32> to vector<8x1xf32>
    %44 = arith.mulf %10, %19 : vector<8x128xf32>
    %cst_26 = arith.constant dense<0.000000e+00> : vector<8xf32>
    %45 = vector.multi_reduction <add>, %44, %cst_26 [1] : vector<8x128xf32> to vector<8xf32>
    %46 = vector.shape_cast %45 : vector<8xf32> to vector<8x1xf32>
    %47 = arith.mulf %6, %4 : vector<8x128xf32>
    %cst_27 = arith.constant dense<0.000000e+00> : vector<8xf32>
    %48 = vector.multi_reduction <add>, %47, %cst_27 [1] : vector<8x128xf32> to vector<8xf32>
    %49 = vector.shape_cast %48 : vector<8xf32> to vector<8x1xf32>
    %50 = arith.mulf %8, %4 : vector<8x128xf32>
    %cst_28 = arith.constant dense<0.000000e+00> : vector<8xf32>
    %51 = vector.multi_reduction <add>, %50, %cst_28 [1] : vector<8x128xf32> to vector<8xf32>
    %52 = vector.shape_cast %51 : vector<8xf32> to vector<8x1xf32>
    %53 = arith.mulf %10, %4 : vector<8x128xf32>
    %cst_29 = arith.constant dense<0.000000e+00> : vector<8xf32>
    %54 = vector.multi_reduction <add>, %53, %cst_29 [1] : vector<8x128xf32> to vector<8xf32>
    %55 = vector.shape_cast %54 : vector<8xf32> to vector<8x1xf32>
    %cst_30 = arith.constant dense<0.000000e+00> : vector<8xf32>
    %56 = vector.multi_reduction <add>, %13, %cst_30 [1] : vector<8x128xf32> to vector<8xf32>
    %57 = vector.shape_cast %56 : vector<8xf32> to vector<8x1xf32>
    %cst_31 = arith.constant dense<0.000000e+00> : vector<8xf32>
    %58 = vector.multi_reduction <add>, %16, %cst_31 [1] : vector<8x128xf32> to vector<8xf32>
    %59 = vector.shape_cast %58 : vector<8xf32> to vector<8x1xf32>
    %cst_32 = arith.constant dense<0.000000e+00> : vector<8xf32>
    %60 = vector.multi_reduction <add>, %19, %cst_32 [1] : vector<8x128xf32> to vector<8xf32>
    %61 = vector.shape_cast %60 : vector<8xf32> to vector<8x1xf32>
    %cst_33 = arith.constant dense<0.000000e+00> : vector<8xf32>
    %62 = vector.multi_reduction <add>, %4, %cst_33 [1] : vector<8x128xf32> to vector<8xf32>
    %63 = vector.shape_cast %62 : vector<8xf32> to vector<8x1xf32>
    %64 = tpu.concatenate %22, %25, %28, %31, %34, %37, %40, %43, %46, %49, %52, %55, %57, %59, %61, %63 in 1 : vector<8x1xf32>, vector<8x1xf32>, vector<8x1xf32>, vector<8x1xf32>, vector<8x1xf32>, vector<8x1xf32>, vector<8x1xf32>, vector<8x1xf32>, vector<8x1xf32>, vector<8x1xf32>, vector<8x1xf32>, vector<8x1xf32>, vector<8x1xf32>, vector<8x1xf32>, vector<8x1xf32>, vector<8x1xf32> -> vector<8x16xf32>
    %c0_i32 = arith.constant 0 : i32
    %65 = arith.cmpi eq, %arg1, %c0_i32 : i32
    %66 = arith.extui %65 : i1 to i32
    %c0_i32_34 = arith.constant 0 : i32
    %67 = arith.cmpi ne, %66, %c0_i32_34 : i32
    scf.if %67 {
      %c0_39 = arith.constant 0 : index
      %c0_40 = arith.constant 0 : index
      %74 = vector.load %arg5[%c0_39, %c0_40] : memref<8x16xf32, #tpu.memory_space<vmem>>, vector<8x16xf32>
      tpu.vector_store %arg5[%c0_39, %c0_40], %64 {strides = array<i32>} : memref<8x16xf32, #tpu.memory_space<vmem>>, vector<8x16xf32>,
    } else {
    }
    %c0_i32_35 = arith.constant 0 : i32
    %68 = arith.cmpi sgt, %arg1, %c0_i32_35 : i32
    %69 = arith.extui %68 : i1 to i32
    %c0_i32_36 = arith.constant 0 : i32
    %70 = arith.cmpi ne, %69, %c0_i32_36 : i32
    scf.if %70 {
      %c0_39 = arith.constant 0 : index
      %c0_40 = arith.constant 0 : index
      %74 = vector.load %arg5[%c0_39, %c0_40] : memref<8x16xf32, #tpu.memory_space<vmem>>, vector<8x16xf32>
      %75 = arith.addf %74, %64 : vector<8x16xf32>
      %c0_41 = arith.constant 0 : index
      %c0_42 = arith.constant 0 : index
      %76 = vector.load %arg5[%c0_41, %c0_42] : memref<8x16xf32, #tpu.memory_space<vmem>>, vector<8x16xf32>
      tpu.vector_store %arg5[%c0_41, %c0_42], %75 {strides = array<i32>} : memref<8x16xf32, #tpu.memory_space<vmem>>, vector<8x16xf32>,
    } else {
    }
    %c0_i32_37 = arith.constant 0 : i32
    %71 = arith.cmpi eq, %arg1, %c0_i32_37 : i32
    %72 = arith.extui %71 : i1 to i32
    %c0_i32_38 = arith.constant 0 : i32
    %73 = arith.cmpi ne, %72, %c0_i32_38 : i32
    scf.if %73 {
      %c0_39 = arith.constant 0 : index
      %c0_40 = arith.constant 0 : index
      %74 = vector.load %arg5[%c0_39, %c0_40] : memref<8x16xf32, #tpu.memory_space<vmem>>, vector<8x16xf32>
      %75 = vector.extract_strided_slice %74 {offsets = [0, 0], sizes = [8, 9], strides = [1, 1]} : vector<8x16xf32> to vector<8x9xf32>
      %76 = vector.extract_strided_slice %74 {offsets = [0, 9], sizes = [8, 3], strides = [1, 1]} : vector<8x16xf32> to vector<8x3xf32>
      %77 = vector.extract_strided_slice %74 {offsets = [0, 12], sizes = [8, 3], strides = [1, 1]} : vector<8x16xf32> to vector<8x3xf32>
      %78 = vector.extract_strided_slice %74 {offsets = [0, 15], sizes = [8, 1], strides = [1, 1]} : vector<8x16xf32> to vector<8x1xf32>
      %cst_41 = arith.constant 9.99999974E-6 : f32
      %79 = vector.broadcast %cst_41 : f32 to vector<8x1xf32>
      %80 = arith.addf %78, %79 : vector<8x1xf32>
      %cst_42 = arith.constant 1.000000e+00 : f32
      %81 = vector.broadcast %cst_42 : f32 to vector<8x1xf32>
      %82 = arith.divf %81, %80 : vector<8x1xf32>
      %83 = vector.broadcast %82 : vector<8x1xf32> to vector<8x3xf32>
      %84 = arith.mulf %76, %83 : vector<8x3xf32>
      %85 = vector.broadcast %82 : vector<8x1xf32> to vector<8x3xf32>
      %86 = arith.mulf %77, %85 : vector<8x3xf32>
      %87 = arith.mulf %78, %82 : vector<8x1xf32>
      %88 = vector.extract_strided_slice %84 {offsets = [0, 0], sizes = [8, 1], strides = [1, 1]} : vector<8x3xf32> to vector<8x1xf32>
      %89 = vector.extract_strided_slice %86 {offsets = [0, 0], sizes = [8, 1], strides = [1, 1]} : vector<8x3xf32> to vector<8x1xf32>
      %90 = arith.mulf %88, %89 : vector<8x1xf32>
      %91 = vector.extract_strided_slice %84 {offsets = [0, 0], sizes = [8, 1], strides = [1, 1]} : vector<8x3xf32> to vector<8x1xf32>
      %92 = vector.extract_strided_slice %86 {offsets = [0, 1], sizes = [8, 1], strides = [1, 1]} : vector<8x3xf32> to vector<8x1xf32>
      %93 = arith.mulf %91, %92 : vector<8x1xf32>
      %94 = vector.extract_strided_slice %84 {offsets = [0, 0], sizes = [8, 1], strides = [1, 1]} : vector<8x3xf32> to vector<8x1xf32>
      %95 = vector.extract_strided_slice %86 {offsets = [0, 2], sizes = [8, 1], strides = [1, 1]} : vector<8x3xf32> to vector<8x1xf32>
      %96 = arith.mulf %94, %95 : vector<8x1xf32>
      %97 = vector.extract_strided_slice %84 {offsets = [0, 1], sizes = [8, 1], strides = [1, 1]} : vector<8x3xf32> to vector<8x1xf32>
      %98 = vector.extract_strided_slice %86 {offsets = [0, 0], sizes = [8, 1], strides = [1, 1]} : vector<8x3xf32> to vector<8x1xf32>
      %99 = arith.mulf %97, %98 : vector<8x1xf32>
      %100 = vector.extract_strided_slice %84 {offsets = [0, 1], sizes = [8, 1], strides = [1, 1]} : vector<8x3xf32> to vector<8x1xf32>
      %101 = vector.extract_strided_slice %86 {offsets = [0, 1], sizes = [8, 1], strides = [1, 1]} : vector<8x3xf32> to vector<8x1xf32>
      %102 = arith.mulf %100, %101 : vector<8x1xf32>
      %103 = vector.extract_strided_slice %84 {offsets = [0, 1], sizes = [8, 1], strides = [1, 1]} : vector<8x3xf32> to vector<8x1xf32>
      %104 = vector.extract_strided_slice %86 {offsets = [0, 2], sizes = [8, 1], strides = [1, 1]} : vector<8x3xf32> to vector<8x1xf32>
      %105 = arith.mulf %103, %104 : vector<8x1xf32>
      %106 = vector.extract_strided_slice %84 {offsets = [0, 2], sizes = [8, 1], strides = [1, 1]} : vector<8x3xf32> to vector<8x1xf32>
      %107 = vector.extract_strided_slice %86 {offsets = [0, 0], sizes = [8, 1], strides = [1, 1]} : vector<8x3xf32> to vector<8x1xf32>
      %108 = arith.mulf %106, %107 : vector<8x1xf32>
      %109 = vector.extract_strided_slice %84 {offsets = [0, 2], sizes = [8, 1], strides = [1, 1]} : vector<8x3xf32> to vector<8x1xf32>
      %110 = vector.extract_strided_slice %86 {offsets = [0, 1], sizes = [8, 1], strides = [1, 1]} : vector<8x3xf32> to vector<8x1xf32>
      %111 = arith.mulf %109, %110 : vector<8x1xf32>
      %112 = vector.extract_strided_slice %84 {offsets = [0, 2], sizes = [8, 1], strides = [1, 1]} : vector<8x3xf32> to vector<8x1xf32>
      %113 = vector.extract_strided_slice %86 {offsets = [0, 2], sizes = [8, 1], strides = [1, 1]} : vector<8x3xf32> to vector<8x1xf32>
      %114 = arith.mulf %112, %113 : vector<8x1xf32>
      %115 = tpu.concatenate %90, %93, %96, %99, %102, %105, %108, %111, %114 in 1 : vector<8x1xf32>, vector<8x1xf32>, vector<8x1xf32>, vector<8x1xf32>, vector<8x1xf32>, vector<8x1xf32>, vector<8x1xf32>, vector<8x1xf32>, vector<8x1xf32> -> vector<8x9xf32>
      %116 = vector.broadcast %82 : vector<8x1xf32> to vector<8x9xf32>
      %117 = arith.mulf %75, %116 : vector<8x9xf32>
      %cst_43 = arith.constant 2.000000e+00 : f32
      %118 = vector.broadcast %cst_43 : f32 to vector<8x1xf32>
      %119 = arith.subf %118, %87 : vector<8x1xf32>
      %120 = vector.broadcast %119 : vector<8x1xf32> to vector<8x9xf32>
      %121 = arith.mulf %115, %120 : vector<8x9xf32>
      %122 = arith.subf %117, %121 : vector<8x9xf32>
      %123 = tpu.concatenate %122, %84, %86, %78 in 1 : vector<8x9xf32>, vector<8x3xf32>, vector<8x3xf32>, vector<8x1xf32> -> vector<8x16xf32>
      %c0_44 = arith.constant 0 : index
      %c0_45 = arith.constant 0 : index
      %124 = vector.load %arg5[%c0_44, %c0_45] : memref<8x16xf32, #tpu.memory_space<vmem>>, vector<8x16xf32>
      tpu.vector_store %arg5[%c0_44, %c0_45], %123 {strides = array<i32>} : memref<8x16xf32, #tpu.memory_space<vmem>>, vector<8x16xf32>,
    } else {
    }
    return
  }
  func.func @transform_0(%arg0: i32, %arg1: i32) -> (i32, i32, i32) {
    %c0_i32 = arith.constant 0 : i32
    %c0_i32_0 = arith.constant 0 : i32
    return %c0_i32, %arg0, %arg1 : i32, i32, i32
  }
  func.func @transform_1(%arg0: i32, %arg1: i32) -> (i32, i32, i32) {
    %c0_i32 = arith.constant 0 : i32
    %c0_i32_0 = arith.constant 0 : i32
    return %c0_i32, %arg0, %arg1 : i32, i32, i32
  }
  func.func @transform_2(%arg0: i32, %arg1: i32) -> (i32, i32) {
    %c0_i32 = arith.constant 0 : i32
    return %arg0, %arg1 : i32, i32
  }
  func.func @transform_3(%arg0: i32, %arg1: i32) -> (i32, i32) {
    %c0_i32 = arith.constant 0 : i32
    %c0_i32_0 = arith.constant 0 : i32
    return %arg0, %c0_i32 : i32, i32
  }
}

</mosaic_0001>

<bundles_post_ra>
// kernel: tpu_custom_call.1
= control target key start
LH: loop header
LB: loop body
LE: loop exit
PB: predicated region body
PF: predicated region fallthrough
CT: control target
= control target key end

     0   :  { %8 = vsyncpa [#allocation3], 0  ;;  %s447_s0 = inlined_call_operand.hbm [shape: f32[3,8,128], index: 0, kind: input, shape index: {}]   ;;  %s448_s1 = inlined_call_operand.hbm [shape: f32[3,8,128], index: 1, kind: input, shape index: {}]   ;;  %s449_s2 = inlined_call_operand.hbm [shape: f32[8,128], index: 2, kind: input, shape index: {}]   ;;  %s450_s3 = inlined_call_operand.hbm [shape: f32[8,16], index: 3, kind: output, shape index: {}]  }
   0x1   :  { %9 = vsyncpa [#allocation6], 0 }
   0x2   :  { %10 = vsyncpa [#allocation4], 0  ;;  %s367_s12 = smov [#allocation5]   ;;  %s368_s14 = smov [#allocation2]  }
   0x3   :  { %s28_s13 = sshll.u32 %s367_s12, 4  ;;  %s16_s15 = sshll.u32 %s368_s14, 4  ;;  %s29_s13 = int_to_ptr.vmem [resolvable:$true] %s28_s13  ;;  %s17_s15 = int_to_ptr.vmem [resolvable:$true] %s16_s15 }
   0x4   :  { %s289_s16 = scalar_lea.vmem %s29_s13, 384  ;;  %p294_p1 = scmp.lt.s32.totalorder %s29_s13, %s29_s13 }
   0x5   :  { %p290_p0 = scmp.ne.s32.totalorder %s29_s13, %s289_s16  ;;  %p295_p2 = scmp.lt.s32.totalorder %s289_s16, %s289_s16 }
   0x7   :  { %p296_p3 = por %p295_p2, %p294_p1 }
   0x9   :  { %p297_p4 = pnand %p296_p3, %p290_p0 }
   0xb   :  { %300 = shalt.err (!%p297_p4)
}
   0xc   :  { %s369_s17 = smov 128   ;;  %s370_s18 = smov 8  }
   0xd   :  { %34 = dma.hbm_to_vmem [thread:$0]  %s448_s1, 384, %s29_s13, [#allocation6], %s369_s17, %s369_s17, %s370_s18  }
   0xe   :  { %s309_s21 = scalar_lea.vmem %s17_s15, 384  ;;  %p314_p6 = scmp.lt.s32.totalorder %s17_s15, %s17_s15 }
   0xf   :  { %p310_p5 = scmp.ne.s32.totalorder %s17_s15, %s309_s21  ;;  %p315_p7 = scmp.lt.s32.totalorder %s309_s21, %s309_s21 }
  0x11   :  { %p316_p8 = por %p315_p7, %p314_p6 }
  0x13   :  { %p317_p9 = pnand %p316_p8, %p310_p5 }
  0x15   :  { %320 = shalt.err (!%p317_p9)
}
  0x16   :  { %22 = dma.hbm_to_vmem [thread:$0]  %s447_s0, 384, %s17_s15, [#allocation3], %s369_s17, %s369_s17, %s370_s18  }
  0x17   :  { %s371_s24 = smov [#allocation7]  }
  0x18   :  { %s41_s25 = sshll.u32 %s371_s24, 4  ;;  %s42_s25 = int_to_ptr.vmem [resolvable:$true] %s41_s25 }
  0x19   :  { %s329_s26 = scalar_lea.vmem %s42_s25, 128  ;;  %p334_p11 = scmp.lt.s32.totalorder %s42_s25, %s42_s25 }
  0x1a   :  { %p330_p10 = scmp.ne.s32.totalorder %s42_s25, %s329_s26  ;;  %p335_p12 = scmp.lt.s32.totalorder %s329_s26, %s329_s26 }
  0x1c   :  { %p336_p13 = por %p335_p12, %p334_p11 }
  0x1e   :  { %p337_p0 = pnand %p336_p13, %p330_p10 }
  0x20   :  { %340 = shalt.err (!%p337_p0)
}
  0x21   :  { %44 = dma.hbm_to_vmem [thread:$0]  %s449_s2, 128, %s42_s25, [#allocation6]  }
  0x22   :  { %361 = dma.done.wait [#allocation3], 384  }
  0x23   :  { %362 = vsyncadd [#allocation3], 4294966912 }
  0x24   :  { %363 = dma.done.wait [#allocation6], 512  }
  0x25   :  { %364 = vsyncadd [#allocation6], 4294966784  ;;  %v54_v0 = vld [vmem:[#allocation7] sm:$0xff]  ;;  %v62_v1 = vld [vmem:[#allocation5] sm:$0xff]  ;;  %v372_v23 = vmov 15   ;;  %vm114_vm1 = vcmask 7168  }
  0x26   :  { %vm55_vm0 = vcmp.lt.f32.partialorder %v54_v0, 0.5  ;;  %v68_v2 = vld [vmem:[#allocation5 + $0x10] sm:$0xff]  ;;  %v65_v3 = vld [vmem:[#allocation5 + $0x8] sm:$0xff]  ;;  %v61_v16 = vld [vmem:[#allocation2 + $0x10] sm:$0xff]  ;;  %278 = vset.pattern.permute.xlu0 %v372_v23  ;;  %vm116_vm2 = vcmask 15360   ;;  %vm118_vm3 = vcmask 23552  }
  0x27   :  { %v56_v4 = vsel %vm55_vm0, 0.0, %v54_v0  ;;  %v57_v5 = vld [vmem:[#allocation2] sm:$0xff]  ;;  %v59_v9 = vld [vmem:[#allocation2 + $0x8] sm:$0xff]  ;;  %vm120_vm4 = vcmask 31744   ;;  %vm122_vm5 = vcmask 39936   ;;  %vm124_vm6 = vcmask 48128  }
  0x28   :  { %v63_v6 = vmul.f32 %v62_v1, %v56_v4  ;;  %v69_v7 = vmul.f32 %v68_v2, %v56_v4  ;;  %v66_v8 = vmul.f32 %v65_v3, %v56_v4  ;;  %v97_v20 = vmul.f32 %v57_v5, %v56_v4  ;;  %s373_s0 = smov 125   ;;  %s374_s2 = smov 124  }
  0x29   :  { %v100_v21 = vmul.f32 %v59_v9, %v56_v4  ;;  %v103_v22 = vmul.f32 %v61_v16, %v56_v4  ;;  %vm126_vm7 = vcmask 56320   ;;  %vm128_vm8 = vcmask 64512   ;;  %s375_s28 = smov 123   ;;  %s376_s29 = smov 126  }
  0x2a   :  { %v70_v10 = vmul.f32 %v63_v6, %v57_v5  ;;  %v76_v11 = vmul.f32 %v69_v7, %v57_v5  ;;  %v73_v12 = vmul.f32 %v66_v8, %v57_v5  ;;  %v79_v13 = vmul.f32 %v63_v6, %v59_v9  ;;  %s377_s30 = smov 127   ;;  %s378_s4 = smov 119  }
  0x2b   :  { %v82_v14 = vmul.f32 %v66_v8, %v59_v9  ;;  %v85_v15 = vmul.f32 %v69_v7, %v59_v9  ;;  %v88_v17 = vmul.f32 %v63_v6, %v61_v16  ;;  %v91_v18 = vmul.f32 %v66_v8, %v61_v16  ;;  %s379_s5 = smov 120   ;;  %s380_s6 = smov 121  }
  0x2c   :  { %71 = vadd.xlane.f32.xlu0 %v70_v10  ;;  %77 = vadd.xlane.f32.xlu1 %v76_v11  ;;  %v94_v19 = vmul.f32 %v69_v7, %v61_v16  ;;  %vm130_vm9 = vcmask 72704   ;;  %vm132_vm10 = vcmask 80896   ;;  %vm134_vm11 = vcmask 89088   ;;  %s381_s7 = smov 122   ;;  %s382_s8 = smov [#allocation8]  }
  0x2d   :  { %vm136_vm12 = vcmask 97280   ;;  %vm138_vm13 = vcmask 105472   ;;  %vm140_vm14 = vcmask 113664   ;;  %vm142_vm15 = vcmask 121856   ;;  %s252_s9 = sshll.u32 %s382_s8, 4  ;;  %s253_s9 = int_to_ptr.vmem [resolvable:$true] %s252_s9 }
  0x2e   :  { %vm148_vm0 = vcmask 130048   ;;  %s341_s10 = scalar_lea.vmem %s253_s9, 128  ;;  %p346_p2 = scmp.lt.s32.totalorder %s253_s9, %s253_s9 }
  0x2f   :  { %p342_p1 = scmp.ne.s32.totalorder %s253_s9, %s341_s10  ;;  %p347_p3 = scmp.lt.s32.totalorder %s341_s10, %s341_s10 }
  0x30   :  { %74 = vadd.xlane.f32.xlu0 %v73_v12  ;;  %80 = vadd.xlane.f32.xlu1 %v79_v13 }
  0x31   :  { %p348_p4 = por %p347_p3, %p346_p2 }
  0x33   :  { %p349_p5 = pnand %p348_p4, %p342_p1 }
  0x34   :  { %83 = vadd.xlane.f32.xlu0 %v82_v14  ;;  %86 = vadd.xlane.f32.xlu1 %v85_v15 }
  0x38   :  { %89 = vadd.xlane.f32.xlu0 %v88_v17  ;;  %92 = vadd.xlane.f32.xlu1 %v91_v18 }
  0x3c   :  { %95 = vadd.xlane.f32.xlu0 %v94_v19  ;;  %98 = vadd.xlane.f32.xlu1 %v97_v20 }
  0x40   :  { %101 = vadd.xlane.f32.xlu0 %v100_v21  ;;  %104 = vadd.xlane.f32.xlu1 %v103_v22 }
  0x44   :  { %106 = vadd.xlane.f32.xlu0 %v63_v6  ;;  %108 = vadd.xlane.f32.xlu1 %v66_v8 }
  0x48   :  { %110 = vadd.xlane.f32.xlu0 %v69_v7  ;;  %112 = vadd.xlane.f32.xlu1 %v56_v4 }
  0xb5   :  { %v72_v24 = vpop.xlane.xlu0 %71  ;;  %v78_v25 = vpop.xlane.xlu1 %77 }
  0xb9   :  { %v75_v26 = vpop.xlane.xlu0 %74  ;;  %v81_v27 = vpop.xlane.xlu1 %80 }
  0xba   :  { %v115_v28 = vsel %vm114_vm1, %v72_v24, %v75_v26 }
  0xbb   :  { %v117_v29 = vsel %vm116_vm2, %v115_v28, %v78_v25 }
  0xbc   :  { %v119_v30 = vsel %vm118_vm3, %v117_v29, %v81_v27 }
  0xbd   :  { %v84_v31 = vpop.xlane.xlu0 %83  ;;  %v87_v32 = vpop.xlane.xlu1 %86 }
  0xbe   :  { %v121_v33 = vsel %vm120_vm4, %v119_v30, %v84_v31 }
  0xbf   :  { %v123_v34 = vsel %vm122_vm5, %v121_v33, %v87_v32 }
  0xc1   :  { %v90_v35 = vpop.xlane.xlu0 %89  ;;  %v93_v36 = vpop.xlane.xlu1 %92 }
  0xc2   :  { %v125_v37 = vsel %vm124_vm6, %v123_v34, %v90_v35 }
  0xc3   :  { %v127_v38 = vsel %vm126_vm7, %v125_v37, %v93_v36 }
  0xc5   :  { %v96_v39 = vpop.xlane.xlu0 %95  ;;  %v99_v40 = vpop.xlane.xlu1 %98 }
  0xc6   :  { %v129_v41 = vsel %vm128_vm8, %v127_v38, %v96_v39 }
  0xc7   :  { %v131_v42 = vsel %vm130_vm9, %v129_v41, %v99_v40 }
  0xc9   :  { %v102_v43 = vpop.xlane.xlu0 %101  ;;  %v105_v44 = vpop.xlane.xlu1 %104 }
  0xca   :  { %v133_v45 = vsel %vm132_vm10, %v131_v42, %v102_v43 }
  0xcb   :  { %v135_v46 = vsel %vm134_vm11, %v133_v45, %v105_v44 }
  0xcd   :  { %v107_v47 = vpop.xlane.xlu0 %106  ;;  %v109_v48 = vpop.xlane.xlu1 %108 }
  0xce   :  { %v137_v49 = vsel %vm136_vm12, %v135_v46, %v107_v47 }
  0xcf   :  { %v139_v50 = vsel %vm138_vm13, %v137_v49, %v109_v48 }
  0xd1   :  { %v111_v51 = vpop.xlane.xlu0 %110  ;;  %v113_v52 = vpop.xlane.xlu1 %112 }
  0xd2   :  { %v141_v53 = vsel %vm140_vm14, %v139_v50, %v111_v51 }
  0xd3   :  { %v143_v54 = vsel %vm142_vm15, %v141_v53, %v113_v52 }
  0xd4   :  { %149 = vst.msk [vmem:[#allocation8] sm:$0xff] %vm148_vm0, %v143_v54 }
  0xdb   :  { %v424_v55 = vld [vmem:[#allocation8] sm:$0xff] }
  0xdc   :  { %v162_v56 = vadd.f32 1e-05, %v424_v55 }
  0xde   :  { %279 = vrcp.f32 %v162_v56 }
  0xeb   :  { %v280_v57 = vpop.eup %279 }
  0xec   :  { %167 = vperm.xlu0 %278, %v280_v57   ;;  %v171_v58 = vmul.f32 %v280_v57, %v424_v55 }
  0xee   :  { %v233_v59 = vsub.f32 2.0, %v171_v58 }
  0xf0   :  { %236 = vperm.xlu0 %278, %v233_v59  }
 0x167   :  { %v168_v60 = vpop.permute.xlu0 %167 }
 0x168   :  { %v170_v61 = vmul.f32 %v168_v60, %v424_v55 }
 0x16a   :  { %173 = vrot.lane.b32.xlu1 %v170_v61, %s373_s0 }
 0x16b   :  { %v237_v10 = vpop.permute.xlu0 %236 }
 0x16e   :  { %177 = vrot.lane.b32.xlu1 %v170_v61, %s374_s2 }
 0x172   :  { %181 = vrot.lane.b32.xlu1 %v170_v61, %s375_s28 }
 0x176   :  { %185 = vrot.lane.b32.xlu1 %v170_v61, %s376_s29 }
 0x17a   :  { %189 = vrot.lane.b32.xlu1 %v170_v61, %s377_s30 }
 0x1dc   :  { %v174_v62 = vpop.permute.xlu1 %173 }
 0x1dd   :  { %v176_v63 = vmul.f32 %v174_v62, %v170_v61 }
 0x1df   :  { %194 = vrot.lane.b32.xlu1 %v176_v63, %s378_s4 }
 0x1e0   :  { %v178_v0 = vpop.permute.xlu1 %177 }
 0x1e1   :  { %v180_v1 = vmul.f32 %v178_v0, %v170_v61 }
 0x1e3   :  { %198 = vrot.lane.b32.xlu1 %v180_v1, %s379_s5 }
 0x1e4   :  { %v182_v2 = vpop.permute.xlu1 %181 }
 0x1e5   :  { %v184_v3 = vmul.f32 %v182_v2, %v170_v61 }
 0x1e7   :  { %202 = vrot.lane.b32.xlu1 %v184_v3, %s380_s6 }
 0x1e8   :  { %v186_v4 = vpop.permute.xlu1 %185 }
 0x1e9   :  { %v188_v5 = vmul.f32 %v186_v4, %v170_v61 }
 0x1eb   :  { %209 = vrot.lane.b32.xlu1 %v176_v63, %s381_s7  ;;  %206 = vrot.lane.b32.xlu0 %v188_v5, %s380_s6 }
 0x1ec   :  { %v190_v6 = vpop.permute.xlu1 %189 }
 0x1ed   :  { %v192_v7 = vmul.f32 %v190_v6, %v170_v61 }
 0x1ef   :  { %212 = vrot.lane.b32.xlu1 %v180_v1, %s375_s28  ;;  %216 = vrot.lane.b32.xlu0 %v192_v7, %s375_s28 }
 0x1f3   :  { %219 = vrot.lane.b32.xlu1 %v188_v5, %s374_s2  ;;  %222 = vrot.lane.b32.xlu0 %v176_v63, %s373_s0 }
 0x251   :  { %v195_v8 = vpop.permute.xlu1 %194 }
 0x255   :  { %v199_v9 = vpop.permute.xlu1 %198 }
 0x256   :  { %v225_v12 = vsel %vm114_vm1, %v195_v8, %v199_v9 }
 0x259   :  { %v203_v11 = vpop.permute.xlu1 %202 }
 0x25a   :  { %v226_v13 = vsel %vm116_vm2, %v225_v12, %v203_v11 }
 0x25d   :  { %v210_v14 = vpop.permute.xlu1 %209  ;;  %v207_v15 = vpop.permute.xlu0 %206 }
 0x25e   :  { %v227_v16 = vsel %vm118_vm3, %v226_v13, %v207_v15 }
 0x25f   :  { %v228_v18 = vsel %vm120_vm4, %v227_v16, %v210_v14 }
 0x261   :  { %v213_v17 = vpop.permute.xlu1 %212  ;;  %v217_v19 = vpop.permute.xlu0 %216 }
 0x262   :  { %v229_v20 = vsel %vm122_vm5, %v228_v18, %v213_v17 }
 0x263   :  { %v230_v21 = vsel %vm124_vm6, %v229_v20, %v217_v19 }
 0x265   :  { %v220_v22 = vpop.permute.xlu1 %219  ;;  %v223_v23 = vpop.permute.xlu0 %222 }
 0x266   :  { %v231_v24 = vsel %vm126_vm7, %v230_v21, %v220_v22 }
 0x267   :  { %v232_v25 = vsel %vm128_vm8, %v231_v24, %v223_v23 }
 0x268   :  { %v239_v26 = vmul.f32 %v237_v10, %v232_v25 }
 0x26a   :  { %v240_v27 = vsub.f32 %v170_v61, %v239_v26 }
 0x26c   :  { %v241_v28 = vsel %vm130_vm9, %v240_v27, %v170_v61 }
 0x26d   :  { %v242_v29 = vsel %vm136_vm12, %v241_v28, %v170_v61 }
 0x26e   :  { %v243_v30 = vsel %vm142_vm15, %v242_v29, %v424_v55 }
 0x26f   :  { %245 = vst.msk [vmem:[#allocation8] sm:$0xff] %vm148_vm0, %v243_v30 }
 0x270   :  { %352 = shalt.err (!%p349_p5)
}
 0x271   :  { %255 = dma.vmem_to_hbm [thread:$0]  %s253_s9, 128, %s450_s3, [#allocation4]  }
 0x272   :  { %365 = dma.done.wait [#allocation4], 128  }
 0x273   :  { %366 = vsyncadd [#allocation4], 4294967168 }
 0x274   :  { %259 = vsyncpa [#allocation3], 1 }
 0x275   :  { %260 = vsyncpa [#allocation6], 1 }
 0x276   :  { %261 = vsyncpa [#allocation4], 1 }

</bundles_post_ra>
